<compile_context>
chip_gen: v5e
topology: v5e:2x2
jax: 0.10.0
libtpu: 0.0.40
codegen_flags: <defaults>
</compile_context>

<pallas_src>
import jax
import jax.numpy as jnp
from jax.experimental import pallas as pl
from jax.experimental.pallas import tpu as pltpu

LANE = 128


def _round_up(n, m):
    return ((n + m - 1) // m) * m


def _pad_axis(a, axis, target):
    pad = target - a.shape[axis]
    if pad <= 0:
        return a
    widths = [(0, 0)] * a.ndim
    widths[axis] = (0, pad)
    return jnp.pad(a, widths)


def _encoder_kernel(x_ref, w1_ref, b1_ref, w2_ref, b2_ref,
                    w3_ref, b3_ref, w4_ref, b4_ref, o_ref):
    # x arrives as f32; cast to the matmul compute dtype in-kernel (VALU has
    # plenty of slack here, and this avoids an extra XLA convert pass on HBM).
    x = x_ref[...].astype(w1_ref.dtype)
    # layer 1 (normalization already folded into w1/b1): Linear + ReLU
    h = jnp.dot(x, w1_ref[...], preferred_element_type=jnp.float32)
    h = jnp.maximum(h + b1_ref[...], 0.0)
    # layer 2: Linear(256,128) + ReLU
    h = jnp.dot(h.astype(w2_ref.dtype), w2_ref[...],
                preferred_element_type=jnp.float32)
    h = jnp.maximum(h + b2_ref[...], 0.0)
    # layer 3: Linear(128,64->padded 128) + ReLU (padded lanes stay exactly 0)
    h = jnp.dot(h.astype(w3_ref.dtype), w3_ref[...],
                preferred_element_type=jnp.float32)
    h = jnp.maximum(h + b3_ref[...], 0.0)
    # final layer: Linear(padded 128 -> latent_dim), no activation
    out = jnp.dot(h.astype(w4_ref.dtype), w4_ref[...],
                  preferred_element_type=jnp.float32)
    o_ref[...] = (out + b4_ref[...]).astype(o_ref.dtype)


def _prepare_params(params, mean, std, normalize, compute_dtype):
    """Fold normalization into layer 1 (in f32), pad layer-3 output / layer-4
    input to lane width, cast weights to the matmul compute dtype (biases f32).
    Note: extreme `std` values could over/underflow the folded w1 after a bf16
    cast; use compute_dtype=jnp.float32 in that case."""
    w1, b1 = params["w1"], params["b1"]
    w2, b2 = params["w2"], params["b2"]
    w3, b3 = params["w3"], params["b3"]
    w4, b4 = params["w4"], params["b4"]
    D = w1.shape[0]

    if normalize:
        # ((x - mean)/std) @ w1 + b1  ==  x @ (w1/std) + (b1 - (mean/std) @ w1)
        std_v = jnp.broadcast_to(jnp.asarray(std, jnp.float32), (D,))
        mean_v = jnp.broadcast_to(jnp.asarray(mean, jnp.float32), (D,))
        w1_eff = w1 / std_v[:, None]
        b1_eff = b1 - (mean_v / std_v)[None, :] @ w1
    else:
        w1_eff, b1_eff = w1, b1

    h3_pad = _round_up(w3.shape[1], LANE)   # 64 -> 128
    w3_p = _pad_axis(w3, 1, h3_pad)
    b3_p = _pad_axis(b3, 1, h3_pad)
    w4_p = _pad_axis(w4, 0, h3_pad)         # rows padded with zeros to match h

    ws = [w.astype(compute_dtype) for w in (w1_eff, w2, w3_p, w4_p)]
    bs = [b.astype(jnp.float32) for b in (b1_eff, b2, b3_p, b4)]
    return ws, bs


def encoder_forward(x, params, *, mean=0.0, std=1.0, normalize=True,
                    tm=1024, compute_dtype=jnp.bfloat16):
    """x: [B, data_dim] float32.  params: dict of weights [in,out], biases [1,out]."""
    B, D = x.shape
    latent_dim = params["w4"].shape[1]

    ws, bs = _prepare_params(params, mean, std, normalize, compute_dtype)

    # --- row tiling ---------------------------------------------------------
    # Large tiles amortize per-grid-step overhead; keep tm a multiple of 256.
    tm = _round_up(max(tm, 256), 256)
    b_pad = _round_up(B, 8)              # tiny sublane pad only (never to tm)
    x_p = _pad_axis(x, 0, b_pad)         # f32; no wrapper-side dtype cast
    tm_eff = min(tm, b_pad)
    if b_pad >= 512:
        # keep >=2 grid steps so both v7x TensorCores get work (no-op v5e/v6e)
        tm_eff = min(tm_eff, max(256, _round_up(pl.cdiv(b_pad, 2), 256)))
    grid = (pl.cdiv(b_pad, tm_eff),)     # ragged last tile: reads clipped,
                                         # out-of-range rows are never stored

    def const_spec(a):
        # weights/biases: one full-array block, same index every step ->
        # DMA'd once, stays VMEM-resident across the whole grid.
        return pl.BlockSpec(a.shape, lambda i: (0, 0))

    in_specs = [pl.BlockSpec((tm_eff, D), lambda i: (i, 0))]
    operands = [x_p]
    for w, b in zip(ws, bs):
        in_specs += [const_spec(w), const_spec(b)]
        operands += [w, b]

    # cost estimate over the *real* streams (unpadded flops, f32 x read,
    # latent-wide f32 output write)
    flops = 2 * B * sum(params[f"w{i}"].shape[0] * params[f"w{i}"].shape[1]
                        for i in range(1, 5))
    bytes_accessed = (x_p.size * x_p.dtype.itemsize
                      + sum(a.size * a.dtype.itemsize for a in ws + bs)
                      + b_pad * latent_dim * 4)

    out = pl.pallas_call(
        _encoder_kernel,
        out_shape=jax.ShapeDtypeStruct((b_pad, latent_dim), jnp.float32),
        grid_spec=pltpu.PrefetchScalarGridSpec(
            num_scalar_prefetch=0,
            grid=grid,
            in_specs=in_specs,
            # last dim equals the full array dim -> legal narrow block; writes
            # only latent_dim lanes per row (dominant HBM stream shrinks ~16x).
            out_specs=pl.BlockSpec((tm_eff, latent_dim), lambda i: (i, 0)),
        ),
        compiler_params=pltpu.CompilerParams(
            dimension_semantics=("parallel",)),
        cost_estimate=pl.CostEstimate(
            flops=flops, transcendentals=0, bytes_accessed=bytes_accessed),
    )(*operands)

    return out if b_pad == B else out[:B]


def init_encoder_params(key, data_dim, latent_dim, layer_widths=(256, 128, 64)):
    """Deterministic init matching nn.Linear shapes (stored as [in, out])."""
    dims = [data_dim, *layer_widths, latent_dim]
    params = {}
    for i in range(len(dims) - 1):
        key, kw, kb = jax.random.split(key, 3)
        fan_in, fan_out = dims[i], dims[i + 1]
        bound = 1.0 / jnp.sqrt(fan_in)
        params[f"w{i + 1}"] = jax.random.uniform(
            kw, (fan_in, fan_out), jnp.float32, -bound, bound)
        params[f"b{i + 1}"] = jax.random.uniform(
            kb, (1, fan_out), jnp.float32, -bound, bound)
    return params


def _reference_forward(x, params, mean, std):
    h = (x - mean) / std
    h = jnp.maximum(h @ params["w1"] + params["b1"], 0.0)
    h = jnp.maximum(h @ params["w2"] + params["b2"], 0.0)
    h = jnp.maximum(h @ params["w3"] + params["b3"], 0.0)
    return h @ params["w4"] + params["b4"]


if __name__ == "__main__":
    key = jax.random.PRNGKey(0)
    data_dim, latent_dim = 32, 8
    mean, std = 0.5, 2.0

    kx, kp, kx2, kx3 = jax.random.split(key, 4)
    params = init_encoder_params(kp, data_dim, latent_dim)

    # --- small batch: single grid step, tile == batch ---
    x = jax.random.normal(kx, (8, data_dim), jnp.float32)
    z_ref = _reference_forward(x, params, mean, std)

    # exact f32 path
    z_f32 = jax.block_until_ready(
        encoder_forward(x, params, mean=mean, std=std,
                        compute_dtype=jnp.float32))
    assert z_f32.shape == (8, latent_dim)
    assert jnp.allclose(z_f32, z_ref, atol=1e-4, rtol=1e-4)

    # default bf16-MXU path (f32 accumulation); tolerance reflects bf16 inputs
    z_bf16 = jax.block_until_ready(
        encoder_forward(x, params, mean=mean, std=std))
    assert z_bf16.shape == (8, latent_dim)
    assert jnp.allclose(z_bf16, z_ref, atol=1e-1, rtol=1e-1)

    # --- ragged batch (B=300 -> 8-row pad, single tile) ---
    xb = jax.random.normal(kx2, (300, data_dim), jnp.float32)
    zb = jax.block_until_ready(
        encoder_forward(xb, params, mean=mean, std=std))
    zb_ref = _reference_forward(xb, params, mean, std)
    assert zb.shape == (300, latent_dim)
    assert jnp.allclose(zb, zb_ref, atol=1e-1, rtol=1e-1)

    # --- multi-step grid with ragged last tile (B=1040 -> 2 steps of 768) ---
    xc = jax.random.normal(kx3, (1040, data_dim), jnp.float32)
    zc = jax.block_until_ready(
        encoder_forward(xc, params, mean=mean, std=std))
    zc_ref = _reference_forward(xc, params, mean, std)
    assert zc.shape == (1040, latent_dim)
    assert jnp.allclose(zc, zc_ref, atol=1e-1, rtol=1e-1)

    print("KERNEL_OK")
</pallas_src>

<mosaic_0001>
module attributes {stable_mosaic.version = 11 : i64} {
  func.func @_encoder_kernel(%arg0: i32, %arg1: memref<8x32xf32, #tpu.memory_space<vmem>>, %arg2: memref<32x256xf32, #tpu.memory_space<vmem>>, %arg3: memref<1x256xf32, #tpu.memory_space<vmem>>, %arg4: memref<256x128xf32, #tpu.memory_space<vmem>>, %arg5: memref<1x128xf32, #tpu.memory_space<vmem>>, %arg6: memref<128x128xf32, #tpu.memory_space<vmem>>, %arg7: memref<1x128xf32, #tpu.memory_space<vmem>>, %arg8: memref<128x8xf32, #tpu.memory_space<vmem>>, %arg9: memref<1x8xf32, #tpu.memory_space<vmem>>, %arg10: memref<8x8xf32, #tpu.memory_space<vmem>>) attributes {dimension_semantics = [#tpu.dimension_semantics<parallel>], iteration_bounds = array<i64: 1>, scalar_prefetch = 0 : i64, scratch_operands = 0 : i64, tpu.core_type = #tpu.core_type<tc>, window_params = [{transform_indices = @transform_0, window_bounds = array<i64: 8, 32>}, {pipeline_mode = #tpu.pipeline_mode<synchronous>, transform_indices = @transform_1, window_bounds = array<i64: 32, 256>}, {pipeline_mode = #tpu.pipeline_mode<synchronous>, transform_indices = @transform_2, window_bounds = array<i64: 1, 256>}, {pipeline_mode = #tpu.pipeline_mode<synchronous>, transform_indices = @transform_3, window_bounds = array<i64: 256, 128>}, {pipeline_mode = #tpu.pipeline_mode<synchronous>, transform_indices = @transform_4, window_bounds = array<i64: 1, 128>}, {pipeline_mode = #tpu.pipeline_mode<synchronous>, transform_indices = @transform_5, window_bounds = array<i64: 128, 128>}, {pipeline_mode = #tpu.pipeline_mode<synchronous>, transform_indices = @transform_6, window_bounds = array<i64: 1, 128>}, {pipeline_mode = #tpu.pipeline_mode<synchronous>, transform_indices = @transform_7, window_bounds = array<i64: 128, 8>}, {pipeline_mode = #tpu.pipeline_mode<synchronous>, transform_indices = @transform_8, window_bounds = array<i64: 1, 8>}, {transform_indices = @transform_9, window_bounds = array<i64: 8, 8>}]} {
    %c0 = arith.constant 0 : index
    %c0_0 = arith.constant 0 : index
    %0 = vector.load %arg1[%c0, %c0_0] : memref<8x32xf32, #tpu.memory_space<vmem>>, vector<8x32xf32>
    %c0_1 = arith.constant 0 : index
    %c0_2 = arith.constant 0 : index
    %1 = vector.load %arg2[%c0_1, %c0_2] : memref<32x256xf32, #tpu.memory_space<vmem>>, vector<32x256xf32>
    %cst = arith.constant dense<0.000000e+00> : vector<8x256xf32>
    %2 = tpu.matmul %0, %1, %cst {dimension_numbers = #tpu.dot_dimension_numbers<[1], [0], [0], [1], [0, 0, 1, 1], [], []>} : vector<8x32xf32>, vector<32x256xf32>, vector<8x256xf32> -> vector<8x256xf32>
    %c0_3 = arith.constant 0 : index
    %c0_4 = arith.constant 0 : index
    %3 = vector.load %arg3[%c0_3, %c0_4] : memref<1x256xf32, #tpu.memory_space<vmem>>, vector<1x256xf32>
    %4 = vector.broadcast %3 : vector<1x256xf32> to vector<8x256xf32>
    %5 = arith.addf %2, %4 : vector<8x256xf32>
    %cst_5 = arith.constant 0.000000e+00 : f32
    %6 = vector.broadcast %cst_5 : f32 to vector<8x256xf32>
    %7 = arith.maximumf %5, %6 : vector<8x256xf32>
    %c0_6 = arith.constant 0 : index
    %c0_7 = arith.constant 0 : index
    %8 = vector.load %arg4[%c0_6, %c0_7] : memref<256x128xf32, #tpu.memory_space<vmem>>, vector<256x128xf32>
    %cst_8 = arith.constant dense<0.000000e+00> : vector<8x128xf32>
    %9 = tpu.matmul %7, %8, %cst_8 {dimension_numbers = #tpu.dot_dimension_numbers<[1], [0], [0], [1], [0, 0, 1, 1], [], []>} : vector<8x256xf32>, vector<256x128xf32>, vector<8x128xf32> -> vector<8x128xf32>
    %c0_9 = arith.constant 0 : index
    %c0_10 = arith.constant 0 : index
    %10 = vector.load %arg5[%c0_9, %c0_10] : memref<1x128xf32, #tpu.memory_space<vmem>>, vector<1x128xf32>
    %11 = vector.broadcast %10 : vector<1x128xf32> to vector<8x128xf32>
    %12 = arith.addf %9, %11 : vector<8x128xf32>
    %cst_11 = arith.constant 0.000000e+00 : f32
    %13 = vector.broadcast %cst_11 : f32 to vector<8x128xf32>
    %14 = arith.maximumf %12, %13 : vector<8x128xf32>
    %c0_12 = arith.constant 0 : index
    %c0_13 = arith.constant 0 : index
    %15 = vector.load %arg6[%c0_12, %c0_13] : memref<128x128xf32, #tpu.memory_space<vmem>>, vector<128x128xf32>
    %cst_14 = arith.constant dense<0.000000e+00> : vector<8x128xf32>
    %16 = tpu.matmul %14, %15, %cst_14 {dimension_numbers = #tpu.dot_dimension_numbers<[1], [0], [0], [1], [0, 0, 1, 1], [], []>} : vector<8x128xf32>, vector<128x128xf32>, vector<8x128xf32> -> vector<8x128xf32>
    %c0_15 = arith.constant 0 : index
    %c0_16 = arith.constant 0 : index
    %17 = vector.load %arg7[%c0_15, %c0_16] : memref<1x128xf32, #tpu.memory_space<vmem>>, vector<1x128xf32>
    %18 = vector.broadcast %17 : vector<1x128xf32> to vector<8x128xf32>
    %19 = arith.addf %16, %18 : vector<8x128xf32>
    %cst_17 = arith.constant 0.000000e+00 : f32
    %20 = vector.broadcast %cst_17 : f32 to vector<8x128xf32>
    %21 = arith.maximumf %19, %20 : vector<8x128xf32>
    %c0_18 = arith.constant 0 : index
    %c0_19 = arith.constant 0 : index
    %22 = vector.load %arg8[%c0_18, %c0_19] : memref<128x8xf32, #tpu.memory_space<vmem>>, vector<128x8xf32>
    %cst_20 = arith.constant dense<0.000000e+00> : vector<8x8xf32>
    %23 = tpu.matmul %21, %22, %cst_20 {dimension_numbers = #tpu.dot_dimension_numbers<[1], [0], [0], [1], [0, 0, 1, 1], [], []>} : vector<8x128xf32>, vector<128x8xf32>, vector<8x8xf32> -> vector<8x8xf32>
    %c0_21 = arith.constant 0 : index
    %c0_22 = arith.constant 0 : index
    %24 = vector.load %arg9[%c0_21, %c0_22] : memref<1x8xf32, #tpu.memory_space<vmem>>, vector<1x8xf32>
    %25 = vector.broadcast %24 : vector<1x8xf32> to vector<8x8xf32>
    %26 = arith.addf %23, %25 : vector<8x8xf32>
    %c0_23 = arith.constant 0 : index
    %c0_24 = arith.constant 0 : index
    %27 = vector.load %arg10[%c0_23, %c0_24] : memref<8x8xf32, #tpu.memory_space<vmem>>, vector<8x8xf32>
    tpu.vector_store %arg10[%c0_23, %c0_24], %26 {strides = array<i32>} : memref<8x8xf32, #tpu.memory_space<vmem>>, vector<8x8xf32>,
    return
  }
  func.func @transform_0(%arg0: i32) -> (i32, i32) {
    %c0_i32 = arith.constant 0 : i32
    %c0_i32_0 = arith.constant 0 : i32
    return %arg0, %c0_i32 : i32, i32
  }
  func.func @transform_1(%arg0: i32) -> (i32, i32) {
    %c0_i32 = arith.constant 0 : i32
    %c0_i32_0 = arith.constant 0 : i32
    %c0_i32_1 = arith.constant 0 : i32
    return %c0_i32, %c0_i32_0 : i32, i32
  }
  func.func @transform_2(%arg0: i32) -> (i32, i32) {
    %c0_i32 = arith.constant 0 : i32
    %c0_i32_0 = arith.constant 0 : i32
    %c0_i32_1 = arith.constant 0 : i32
    return %c0_i32, %c0_i32_0 : i32, i32
  }
  func.func @transform_3(%arg0: i32) -> (i32, i32) {
    %c0_i32 = arith.constant 0 : i32
    %c0_i32_0 = arith.constant 0 : i32
    %c0_i32_1 = arith.constant 0 : i32
    return %c0_i32, %c0_i32_0 : i32, i32
  }
  func.func @transform_4(%arg0: i32) -> (i32, i32) {
    %c0_i32 = arith.constant 0 : i32
    %c0_i32_0 = arith.constant 0 : i32
    %c0_i32_1 = arith.constant 0 : i32
    return %c0_i32, %c0_i32_0 : i32, i32
  }
  func.func @transform_5(%arg0: i32) -> (i32, i32) {
    %c0_i32 = arith.constant 0 : i32
    %c0_i32_0 = arith.constant 0 : i32
    %c0_i32_1 = arith.constant 0 : i32
    return %c0_i32, %c0_i32_0 : i32, i32
  }
  func.func @transform_6(%arg0: i32) -> (i32, i32) {
    %c0_i32 = arith.constant 0 : i32
    %c0_i32_0 = arith.constant 0 : i32
    %c0_i32_1 = arith.constant 0 : i32
    return %c0_i32, %c0_i32_0 : i32, i32
  }
  func.func @transform_7(%arg0: i32) -> (i32, i32) {
    %c0_i32 = arith.constant 0 : i32
    %c0_i32_0 = arith.constant 0 : i32
    %c0_i32_1 = arith.constant 0 : i32
    return %c0_i32, %c0_i32_0 : i32, i32
  }
  func.func @transform_8(%arg0: i32) -> (i32, i32) {
    %c0_i32 = arith.constant 0 : i32
    %c0_i32_0 = arith.constant 0 : i32
    %c0_i32_1 = arith.constant 0 : i32
    return %c0_i32, %c0_i32_0 : i32, i32
  }
  func.func @transform_9(%arg0: i32) -> (i32, i32) {
    %c0_i32 = arith.constant 0 : i32
    %c0_i32_0 = arith.constant 0 : i32
    return %arg0, %c0_i32 : i32, i32
  }
}

</mosaic_0001>

<bundles_post_ra>
// kernel: tpu_custom_call.1
= control target key start
LH: loop header
LB: loop body
LE: loop exit
PB: predicated region body
PF: predicated region fallthrough
CT: control target
= control target key end

     0   :  { %14 = vsyncpa [#allocation3], 0  ;;  %s571_s0 = inlined_call_operand.vmem [shape: f32[8,32], index: 0, kind: input, shape index: {}]   ;;  %s572_s1 = inlined_call_operand.hbm [shape: f32[32,256], index: 1, kind: input, shape index: {}]   ;;  %s573_s2 = inlined_call_operand.vmem [shape: f32[1,256], index: 2, kind: input, shape index: {}]   ;;  %s574_s3 = inlined_call_operand.hbm [shape: f32[256,128], index: 3, kind: input, shape index: {}]   ;;  %s575_s4 = inlined_call_operand.vmem [shape: f32[1,128], index: 4, kind: input, shape index: {}]   ;;  %s576_s5 = inlined_call_operand.vmem [shape: f32[128,128], index: 5, kind: input, shape index: {}]   ;;  %s577_s6 = inlined_call_operand.vmem [shape: f32[1,128], index: 6, kind: input, shape index: {}]   ;;  %s578_s7 = inlined_call_operand.vmem [shape: f32[128,8], index: 7, kind: input, shape index: {}]   ;;  %s579_s8 = inlined_call_operand.vmem [shape: f32[1,8], index: 8, kind: input, shape index: {}]   ;;  %s580_s9 = inlined_call_operand.hbm [shape: f32[8,8], index: 9, kind: output, shape index: {}]  }
   0x1   :  { %15 = vsyncpa [#allocation6], 0 }
   0x2   :  { %16 = vsyncpa [#allocation4], 0  ;;  %s23_s11 = sshll.u32 %s572_s1, 4  ;;  %s394_s12 = smov [#allocation2]   ;;  %s24_s11 = int_to_ptr.hbm [resolvable:$true] %s23_s11 }
   0x3   :  { %s25_s13 = sshll.u32 %s394_s12, 4  ;;  %s38_s16 = sshll.u32 %s574_s3, 4  ;;  %s26_s13 = int_to_ptr.vmem [resolvable:$true] %s25_s13  ;;  %s39_s16 = int_to_ptr.hbm [resolvable:$true] %s38_s16 }
   0x4   :  { %s395_s17 = smov 256   ;;  %s396_s18 = smov 16  }
   0x5   :  { %31 = dma.hbm_to_vmem [thread:$0]  %s24_s11, 1024, %s26_s13, [#allocation3], %s395_s17, %s395_s17, %s396_s18  }
   0x6   :  { %s397_s19 = smov [#allocation5]   ;;  %s398_s21 = smov 128  }
   0x7   :  { %s40_s20 = sshll.u32 %s397_s19, 4  ;;  %s399_s22 = smov 8   ;;  %s41_s20 = int_to_ptr.vmem [resolvable:$true] %s40_s20 }
   0x8   :  { %46 = dma.hbm_to_vmem [thread:$0]  %s39_s16, 4096, %s41_s20, [#allocation6], %s398_s21, %s398_s21, %s399_s22  }
   0x9   :  { %388 = dma.done.wait [#allocation3], 1024  }
   0xa   :  { %389 = vsyncadd [#allocation3], 4294966272 }
   0xb   :  { %390 = dma.done.wait [#allocation6], 4096  }
   0xc   :  { %391 = vsyncadd [#allocation6], 4294963200  ;;  %v72_v0 = vld [vmem:[#allocation2 + $0x30] sm:$0xff]  ;;  %v70_v1 = vld [vmem:[#allocation2 + $0x20] sm:$0xff]  ;;  %vm80_vm0 = vcmask 261120   ;;  %s400_s20 = smov [#allocation7]  }
   0xd   :  { %v73_v2 = vld [vmem:[#allocation2 + $0x38] sm:$0xff]  ;;  %96 = vmatpush.msra.mxu0 %v72_v0  ;;  %v71_v3 = vld [vmem:[#allocation2 + $0x28] sm:$0xff]  ;;  %v68_v4 = vld [vmem:[#allocation2 + $0x10] sm:$0xff]  ;;  %s291_s21 = sshll.u32 %s400_s20, 4  ;;  %s293_s3 = sshll.u32 %s580_s9, 4  ;;  %vm284_vm1 = vcmask 64512   ;;  %s292_s21 = int_to_ptr.vmem [resolvable:$true] %s291_s21  ;;  %s294_s3 = int_to_ptr.hbm [resolvable:$true] %s293_s3 }
   0xe   :  { %116 = vmatpush.msra.mxu1 %v73_v2  ;;  %v69_v5 = vld [vmem:[#allocation2 + $0x18] sm:$0xff]  ;;  %v140_v7 = vld [vmem:[#allocation5 + $0x70] sm:$0xff]  ;;  %v66_v9 = vld [vmem:[#allocation2] sm:$0xff] }
   0xf   :  { %97 = vmatpush.msra.mxu0 %v70_v1  ;;  %v141_v6 = vld [vmem:[#allocation5 + $0x78] sm:$0xff]  ;;  %v67_v10 = vld [vmem:[#allocation2 + $0x8] sm:$0xff]  ;;  %v156_v11 = vld [vmem:[#allocation5 + $0xf0] sm:$0xff] }
  0x10   :  { %117 = vmatpush.msra.mxu1 %v71_v3  ;;  %v157_v8 = vld [vmem:[#allocation5 + $0xf8] sm:$0xff]  ;;  %162 = vmatpush.msra.mxu2 %v141_v6  ;;  %v65_v12 = vld [vmem:[%s571_s0] sm:$0xff]  ;;  %v139_v13 = vld [vmem:[#allocation5 + $0x68] sm:$0xff] }
  0x11   :  { %182 = vmatpush.msra.mxu3 %v157_v8  ;;  %98 = vmatpush.msra.mxu0 %v68_v4  ;;  %v155_v14 = vld [vmem:[#allocation5 + $0xe8] sm:$0xff]  ;;  %v138_v15 = vld [vmem:[#allocation5 + $0x60] sm:$0xff]  ;;  %v137_v17 = vld [vmem:[#allocation5 + $0x58] sm:$0xff] }
  0x12   :  { %118 = vmatpush.msra.mxu1 %v69_v5  ;;  %163 = vmatpush.msra.mxu2 %v140_v7  ;;  %v154_v16 = vld [vmem:[#allocation5 + $0xe0] sm:$0xff]  ;;  %v153_v18 = vld [vmem:[#allocation5 + $0xd8] sm:$0xff]  ;;  %v136_v19 = vld [vmem:[#allocation5 + $0x50] sm:$0xff] }
  0x13   :  { %183 = vmatpush.msra.mxu3 %v156_v11  ;;  %99 = vmatpush.msra.mxu0 %v66_v9  ;;  %v152_v20 = vld [vmem:[#allocation5 + $0xd0] sm:$0xff]  ;;  %v135_v21 = vld [vmem:[#allocation5 + $0x48] sm:$0xff]  ;;  %v134_v23 = vld [vmem:[#allocation5 + $0x40] sm:$0xff] }
  0x14   :  { %119 = vmatpush.msra.mxu1 %v67_v10  ;;  %304 = vmatmul.msk.f32.vlgmr.msra.gmra.mxu0 %vm80_vm0, %v65_v12  ;;  %v151_v22 = vld [vmem:[#allocation5 + $0xc8] sm:$0xff]  ;;  %v150_v24 = vld [vmem:[#allocation5 + $0xc0] sm:$0xff]  ;;  %v133_v25 = vld [vmem:[#allocation5 + $0x38] sm:$0xff] }
  0x15   :  { %305 = vmatmul.msk.f32.vlgmr.msra.gmra.mxu1 %vm80_vm0, %v65_v12  ;;  %164 = vmatpush.msra.mxu2 %v139_v13  ;;  %v149_v26 = vld [vmem:[#allocation5 + $0xb8] sm:$0xff]  ;;  %v132_v27 = vld [vmem:[#allocation5 + $0x30] sm:$0xff]  ;;  %v131_v29 = vld [vmem:[#allocation5 + $0x28] sm:$0xff] }
  0x16   :  { %184 = vmatpush.msra.mxu3 %v155_v14  ;;  %v148_v28 = vld [vmem:[#allocation5 + $0xb0] sm:$0xff]  ;;  %v147_v30 = vld [vmem:[#allocation5 + $0xa8] sm:$0xff]  ;;  %v130_v31 = vld [vmem:[#allocation5 + $0x20] sm:$0xff] }
  0x17   :  { %165 = vmatpush.msra.mxu2 %v138_v15  ;;  %v146_v32 = vld [vmem:[#allocation5 + $0xa0] sm:$0xff]  ;;  %v129_v33 = vld [vmem:[#allocation5 + $0x18] sm:$0xff]  ;;  %v128_v34 = vld [vmem:[#allocation5 + $0x10] sm:$0xff] }
  0x18   :  { %185 = vmatpush.msra.mxu3 %v154_v16  ;;  %v145_v35 = vld [vmem:[#allocation5 + $0x98] sm:$0xff]  ;;  %v127_v36 = vld [vmem:[#allocation5 + $0x8] sm:$0xff]  ;;  %v144_v37 = vld [vmem:[#allocation5 + $0x90] sm:$0xff] }
  0x19   :  { %166 = vmatpush.msra.mxu2 %v137_v17  ;;  %v126_v38 = vld [vmem:[#allocation5] sm:$0xff]  ;;  %v143_v39 = vld [vmem:[#allocation5 + $0x88] sm:$0xff]  ;;  %v218_v41 = vld [vmem:[%s576_s5 + $0x78] sm:$0xff] }
  0x1a   :  { %186 = vmatpush.msra.mxu3 %v153_v18  ;;  %v142_v40 = vld [vmem:[#allocation5 + $0x80] sm:$0xff]  ;;  %v217_v42 = vld [vmem:[%s576_s5 + $0x70] sm:$0xff]  ;;  %223 = vmatpush.msrb.mxu0 %v218_v41  ;;  %v216_v43 = vld [vmem:[%s576_s5 + $0x68] sm:$0xff] }
  0x1b   :  { %167 = vmatpush.msra.mxu2 %v136_v19  ;;  %v215_v44 = vld [vmem:[%s576_s5 + $0x60] sm:$0xff]  ;;  %v214_v45 = vld [vmem:[%s576_s5 + $0x58] sm:$0xff]  ;;  %v213_v46 = vld [vmem:[%s576_s5 + $0x50] sm:$0xff] }
  0x1c   :  { %187 = vmatpush.msra.mxu3 %v152_v20  ;;  %224 = vmatpush.msrb.mxu0 %v217_v42  ;;  %v212_v47 = vld [vmem:[%s576_s5 + $0x48] sm:$0xff]  ;;  %v211_v48 = vld [vmem:[%s576_s5 + $0x40] sm:$0xff]  ;;  %v210_v49 = vld [vmem:[%s576_s5 + $0x38] sm:$0xff] }
  0x1d   :  { %168 = vmatpush.msra.mxu2 %v135_v21  ;;  %v209_v50 = vld [vmem:[%s576_s5 + $0x30] sm:$0xff]  ;;  %v208_v51 = vld [vmem:[%s576_s5 + $0x28] sm:$0xff]  ;;  %v207_v52 = vld [vmem:[%s576_s5 + $0x20] sm:$0xff] }
  0x1e   :  { %188 = vmatpush.msra.mxu3 %v151_v22  ;;  %225 = vmatpush.msrb.mxu0 %v216_v43  ;;  %v74_v53 = vld [vmem:[%s573_s2] sm:$0x3]  ;;  %v206_v62 = vld [vmem:[%s576_s5 + $0x18] sm:$0xff]  ;;  %v205_v63 = vld [vmem:[%s576_s5 + $0x10] sm:$0xff] }
  0x1f   :  { %169 = vmatpush.msra.mxu2 %v134_v23  ;;  %v76_v54 = vperm.slane %v74_v53, 0  ;;  %v77_v55 = vperm.slane %v74_v53, 1  ;;  %v204_v0 = vld [vmem:[%s576_s5 + $0x8] sm:$0xff]  ;;  %v203_v1 = vld [vmem:[%s576_s5] sm:$0xff]  ;;  %v259_v2 = vld [vmem:[%s578_s7 + $0x78] sm:$0xff] }
  0x20   :  { %189 = vmatpush.msra.mxu3 %v150_v24  ;;  %226 = vmatpush.msrb.mxu0 %v215_v44  ;;  %v258_v3 = vld [vmem:[%s578_s7 + $0x70] sm:$0xff]  ;;  %v257_v4 = vld [vmem:[%s578_s7 + $0x68] sm:$0xff]  ;;  %v256_v5 = vld [vmem:[%s578_s7 + $0x60] sm:$0xff] }
  0x21   :  { %170 = vmatpush.msra.mxu2 %v133_v25  ;;  %264 = vmatpush.msrb.mxu1 %v259_v2  ;;  %v255_v6 = vld [vmem:[%s578_s7 + $0x58] sm:$0xff]  ;;  %v254_v7 = vld [vmem:[%s578_s7 + $0x50] sm:$0xff]  ;;  %v253_v8 = vld [vmem:[%s578_s7 + $0x48] sm:$0xff] }
  0x22   :  { %190 = vmatpush.msra.mxu3 %v149_v26  ;;  %227 = vmatpush.msrb.mxu0 %v214_v45  ;;  %v252_v9 = vld [vmem:[%s578_s7 + $0x40] sm:$0xff]  ;;  %v251_v10 = vld [vmem:[%s578_s7 + $0x38] sm:$0xff]  ;;  %v250_v11 = vld [vmem:[%s578_s7 + $0x30] sm:$0xff] }
  0x23   :  { %171 = vmatpush.msra.mxu2 %v132_v27  ;;  %265 = vmatpush.msrb.mxu1 %v258_v3  ;;  %v249_v12 = vld [vmem:[%s578_s7 + $0x28] sm:$0xff]  ;;  %v248_v13 = vld [vmem:[%s578_s7 + $0x20] sm:$0xff]  ;;  %v247_v15 = vld [vmem:[%s578_s7 + $0x18] sm:$0xff] }
  0x24   :  { %191 = vmatpush.msra.mxu3 %v148_v28  ;;  %228 = vmatpush.msrb.mxu0 %v213_v46  ;;  %v313_v14 = vld [vmem:[%s575_s4] ss:$0 sm:$0xff]  ;;  %v246_v21 = vld [vmem:[%s578_s7 + $0x10] sm:$0xff]  ;;  %v245_v22 = vld [vmem:[%s578_s7 + $0x8] sm:$0xff] }
  0x25   :  { %172 = vmatpush.msra.mxu2 %v131_v29  ;;  %266 = vmatpush.msrb.mxu1 %v257_v4  ;;  %v244_v23 = vld [vmem:[%s578_s7] sm:$0xff] }
  0x26   :  { %192 = vmatpush.msra.mxu3 %v147_v30  ;;  %229 = vmatpush.msrb.mxu0 %v212_v47  ;;  %v314_v24 = vld [vmem:[%s577_s6] ss:$0 sm:$0xff] }
  0x27   :  { %173 = vmatpush.msra.mxu2 %v130_v31  ;;  %267 = vmatpush.msrb.mxu1 %v256_v5  ;;  %v315_v28 = vld [vmem:[%s579_s8] ss:$0 sm:$0xff] }
  0x28   :  { %193 = vmatpush.msra.mxu3 %v146_v32  ;;  %230 = vmatpush.msrb.mxu0 %v211_v48 }
  0x29   :  { %174 = vmatpush.msra.mxu2 %v129_v33  ;;  %268 = vmatpush.msrb.mxu1 %v255_v6 }
  0x2a   :  { %194 = vmatpush.msra.mxu3 %v145_v35  ;;  %231 = vmatpush.msrb.mxu0 %v210_v49 }
  0x2b   :  { %175 = vmatpush.msra.mxu2 %v128_v34  ;;  %269 = vmatpush.msrb.mxu1 %v254_v7 }
  0x2c   :  { %195 = vmatpush.msra.mxu3 %v144_v37  ;;  %232 = vmatpush.msrb.mxu0 %v209_v50 }
  0x2d   :  { %176 = vmatpush.msra.mxu2 %v127_v36  ;;  %270 = vmatpush.msrb.mxu1 %v253_v8 }
  0x2e   :  { %196 = vmatpush.msra.mxu3 %v143_v39  ;;  %233 = vmatpush.msrb.mxu0 %v208_v51 }
  0x2f   :  { %177 = vmatpush.msra.mxu2 %v126_v38  ;;  %271 = vmatpush.msrb.mxu1 %v252_v9 }
  0x30   :  { %197 = vmatpush.msra.mxu3 %v142_v40  ;;  %234 = vmatpush.msrb.mxu0 %v207_v52 }
  0x31   :  { %272 = vmatpush.msrb.mxu1 %v251_v10 }
  0x32   :  { %235 = vmatpush.msrb.mxu0 %v206_v62 }
  0x33   :  { %273 = vmatpush.msrb.mxu1 %v250_v11 }
  0x34   :  { %236 = vmatpush.msrb.mxu0 %v205_v63 }
  0x35   :  { %274 = vmatpush.msrb.mxu1 %v249_v12 }
  0x36   :  { %237 = vmatpush.msrb.mxu0 %v204_v0 }
  0x37   :  { %275 = vmatpush.msrb.mxu1 %v248_v13 }
  0x38   :  { %238 = vmatpush.msrb.mxu0 %v203_v1 }
  0x39   :  { %276 = vmatpush.msrb.mxu1 %v247_v15 }
  0x3b   :  { %277 = vmatpush.msrb.mxu1 %v246_v21 }
  0x3d   :  { %278 = vmatpush.msrb.mxu1 %v245_v22 }
  0x3f   :  { %279 = vmatpush.msrb.mxu1 %v244_v23 }
  0x91   :  { %v101_v56 = vpop.f32.mrf.mxu0 }
  0x92   :  { %v121_v57 = vpop.f32.mrf.mxu1  ;;  %v102_v58 = vadd.f32 %v101_v56, %v76_v54 }
  0x93   :  { %v122_v59 = vadd.f32 %v121_v57, %v77_v55 }
  0x94   :  { %v124_v60 = vmax.f32 %v102_v58, 0.0 }
  0x95   :  { %v125_v61 = vmax.f32 %v122_v59, 0.0 }
  0x96   :  { %178 = vmatmul.f32.vlgmr.msra.gmra.mxu2 %v124_v60 }
  0x97   :  { %198 = vmatmul.f32.vlgmr.msra.gmra.mxu3 %v125_v61 }
 0x119   :  { %v179_v16 = vpop.f32.mrf.mxu2 }
 0x11a   :  { %v199_v17 = vpop.f32.mrf.mxu3  ;;  %v180_v18 = vadd.f32 %v313_v14, %v179_v16 }
 0x11c   :  { %v200_v19 = vadd.f32 %v199_v17, %v180_v18 }
 0x11e   :  { %v202_v20 = vmax.f32 %v200_v19, 0.0 }
 0x120   :  { %239 = vmatmul.f32.vlgmr.msrb.gmra.mxu0 %v202_v20 }
 0x19d   :  { %v240_v25 = vpop.f32.mrf.mxu0 }
 0x19e   :  { %v241_v26 = vadd.f32 %v314_v24, %v240_v25 }
 0x1a0   :  { %v243_v27 = vmax.f32 %v241_v26, 0.0 }
 0x1a2   :  { %280 = vmatmul.f32.vlgmr.msrb.gmra.mxu1 %v243_v27 }
 0x21f   :  { %v281_v29 = vpop.f32.mrf.mxu1 }
 0x220   :  { %v282_v30 = vadd.f32 %v315_v28, %v281_v29 }
 0x222   :  { %285 = vst.msk [vmem:[#allocation7] sm:$0xff] %vm284_vm1, %v282_v30 }
 0x223   :  { %296 = dma.vmem_to_hbm [thread:$0]  %s292_s21, 128, %s294_s3, [#allocation4]  }
 0x224   :  { %392 = dma.done.wait [#allocation4], 128  }
 0x225   :  { %393 = vsyncadd [#allocation4], 4294967168 }
 0x226   :  { %301 = vsyncpa [#allocation3], 1 }
 0x227   :  { %302 = vsyncpa [#allocation6], 1 }
 0x228   :  { %303 = vsyncpa [#allocation4], 1 }

</bundles_post_ra>
